<compile_context>
chip_gen: v5e
topology: v5e:2x2
jax: 0.10.0
libtpu: 0.0.40
codegen_flags: <defaults>
</compile_context>

<pallas_src>
import functools

import jax
import jax.numpy as jnp
from jax.experimental import pallas as pl
from jax.experimental.pallas import tpu as pltpu


def _ce_sum_kernel(pred_ref, tgt_ref, out_ref, acc_ref, *,
                   n_t_inner, tail_valid, t_sub, acc_rows):
    # pred_ref: (1, C, t_sub, 128) input dtype | tgt_ref: (1, t_sub, 128) int32
    # out_ref:  (1, 1, 1, 1) f32              | acc_ref: (acc_rows, 128) f32 scratch
    p_idx = pl.program_id(1)
    t_idx = pl.program_id(2)
    C = pred_ref.shape[1]

    @pl.when(t_idx == 0)
    def _():
        acc_ref[...] = jnp.zeros_like(acc_ref)

    tgt = tgt_ref[0]                                          # (t_sub, 128) int32

    # Running max over the tiny, static class axis (unrolled, lane+sublane dense).
    m = pred_ref[0, 0].astype(jnp.float32)                    # (t_sub, 128) f32 math
    for c in range(1, C):
        m = jnp.maximum(m, pred_ref[0, c].astype(jnp.float32))

    # Fused exp-sum (EUP) + target select (VPU): no (T, C) one-hot materialized.
    s = jnp.zeros_like(m)
    picked = jnp.zeros_like(m)
    for c in range(C):
        row = pred_ref[0, c].astype(jnp.float32)
        s = s + jnp.exp(row - m)
        picked = jnp.where(tgt == c, row, picked)

    ce = (m + jnp.log(s)) - picked                            # (t_sub, 128) per-position CE

    def accumulate(x):
        # Fold (t_sub, 128) onto the (acc_rows, 128) vector accumulator with pure VPU adds;
        # the single cross-lane/sublane reduce happens only in the epilogue.
        if t_sub > acc_rows:
            x = jnp.sum(x.reshape(t_sub // acc_rows, acc_rows, 128), axis=0)
        acc_ref[...] += x

    if tail_valid is not None:
        # Static flag: only the globally-last T tile is partially valid; mask it there only,
        # keep the steady state mask-free.
        is_last_global = jnp.logical_and(p_idx == pl.num_programs(1) - 1,
                                         t_idx == n_t_inner - 1)

        @pl.when(is_last_global)
        def _():
            pos = (jax.lax.broadcasted_iota(jnp.int32, (t_sub, 128), 0) * 128
                   + jax.lax.broadcasted_iota(jnp.int32, (t_sub, 128), 1))
            accumulate(jnp.where(pos < tail_valid, ce, 0.0))

        @pl.when(jnp.logical_not(is_last_global))
        def _():
            accumulate(ce)
    else:
        accumulate(ce)

    @pl.when(t_idx == n_t_inner - 1)
    def _():
        out_ref[...] = jnp.sum(acc_ref[...]).reshape(1, 1, 1, 1)


def cross_entropy_loss_mean(pred_vad, target_vad, *, tile_budget_bytes=2 * 1024 * 1024):
    """pred_vad: (B, C, T) float logits, target_vad: (B, T) int classes -> (B,) float32.

    Equivalent to nn.CrossEntropyLoss(reduction='none')(pred, tgt).sum(dim=1).float().
    """
    B, C, T = pred_vad.shape
    assert target_vad.shape == (B, T)

    # Fold T onto (sublane, lane): T -> (rows, 128). Pad only if T % 128 != 0 (masked in-kernel).
    rows = pl.cdiv(T, 128)
    t_pad = rows * 128
    tgt = target_vad.astype(jnp.int32)
    pred = pred_vad
    if t_pad != T:
        pred = jnp.pad(pred, ((0, 0), (0, 0), (0, t_pad - T)))
        tgt = jnp.pad(tgt, ((0, 0), (0, t_pad - T)))
    pred = pred.reshape(B, C, rows, 128)      # contiguous reshape -> free
    tgt = tgt.reshape(B, rows, 128)

    # T tile from a VMEM budget: one (pred + tgt) tile ~ tile_budget_bytes, 8-sublane aligned.
    row_bytes = 128 * (C * jnp.dtype(pred.dtype).itemsize + 4)   # C pred rows + int32 tgt row
    budget_rows = max(8, (tile_budget_bytes // row_bytes) // 8 * 8)
    t_sub = rows if rows <= budget_rows else budget_rows          # full dim or mult. of 8
    t_tile = t_sub * 128
    n_t_total = pl.cdiv(rows, t_sub)

    # Optional 2-way parallel split of the T axis so the 2 TensorCores on v7x stay balanced
    # when the batch axis alone cannot (B odd / B == 1).
    par = 2 if (B % 2 == 1 and n_t_total % 2 == 0 and n_t_total >= 2) else 1
    n_t_inner = n_t_total // par

    tail = T - (n_t_total - 1) * t_tile                           # valid positions in last tile
    tail_valid = None if tail == t_tile else tail

    acc_rows = 8 if (t_sub >= 8 and t_sub % 8 == 0) else t_sub

    kernel = functools.partial(
        _ce_sum_kernel, n_t_inner=n_t_inner, tail_valid=tail_valid,
        t_sub=t_sub, acc_rows=acc_rows)

    out = pl.pallas_call(
        kernel,
        out_shape=jax.ShapeDtypeStruct((B, par, 1, 1), jnp.float32),
        grid_spec=pltpu.PrefetchScalarGridSpec(
            num_scalar_prefetch=0,
            grid=(B, par, n_t_inner),
            in_specs=[
                pl.BlockSpec((1, C, t_sub, 128),
                             lambda b, p, t: (b, 0, p * n_t_inner + t, 0)),
                pl.BlockSpec((1, t_sub, 128),
                             lambda b, p, t: (b, p * n_t_inner + t, 0)),
            ],
            out_specs=pl.BlockSpec((1, 1, 1, 1), lambda b, p, t: (b, p, 0, 0)),
            scratch_shapes=[pltpu.VMEM((acc_rows, 128), jnp.float32)],
        ),
        compiler_params=pltpu.CompilerParams(
            dimension_semantics=("parallel", "parallel", "arbitrary"),
            vmem_limit_bytes=32 * 1024 * 1024,
        ),
    )(pred, tgt)
    return jnp.sum(out.reshape(B, par), axis=1)


def _reference(pred_vad, target_vad):
    # pure-JAX reference of nn.CrossEntropyLoss(reduction='none') + sum(dim=1)
    logits = jnp.transpose(pred_vad, (0, 2, 1)).astype(jnp.float32)   # (B, T, C)
    logp = jax.nn.log_softmax(logits, axis=-1)
    tgt = target_vad.astype(jnp.int32)
    picked = jnp.take_along_axis(logp, tgt[..., None], axis=-1)[..., 0]
    return jnp.sum(-picked, axis=1).astype(jnp.float32)


if __name__ == "__main__":
    key = jax.random.PRNGKey(0)
    k1, k2, k3, k4, k5, k6 = jax.random.split(key, 6)

    # 1) Primary test: small shapes implied by the module, (B, C, T) = (2, 4, 16).
    B, C, T = 2, 4, 16
    pred = jax.random.normal(k1, (B, C, T), dtype=jnp.float32)
    tgt = jax.random.randint(k2, (B, T), 0, C, dtype=jnp.int32)
    out = jax.block_until_ready(cross_entropy_loss_mean(pred, tgt))
    ref = _reference(pred, tgt)
    assert out.shape == (B,) and out.dtype == jnp.float32
    assert jnp.allclose(out, ref, atol=1e-4, rtol=1e-4), (out, ref)

    # 2) T not a multiple of 128: pad + tail-mask path, single T tile.
    pred2 = jax.random.normal(k3, (2, 4, 1300), dtype=jnp.float32)
    tgt2 = jax.random.randint(k4, (2, 1300), 0, 4, dtype=jnp.int32)
    out2 = jax.block_until_ready(cross_entropy_loss_mean(pred2, tgt2))
    ref2 = _reference(pred2, tgt2)
    assert jnp.allclose(out2, ref2, atol=1e-3, rtol=1e-4), (out2, ref2)

    # 3) Long T, B = 1: VMEM-budget tiles, multi-tile reduction, 2-way parallel T split,
    #    tail mask on the last tile only.
    pred3 = jax.random.normal(k5, (1, 4, 150000), dtype=jnp.float32)
    tgt3 = jax.random.randint(k6, (1, 150000), 0, 4, dtype=jnp.int32)
    out3 = jax.block_until_ready(cross_entropy_loss_mean(pred3, tgt3))
    ref3 = _reference(pred3, tgt3)
    assert jnp.allclose(out3, ref3, atol=1e-2, rtol=2e-4), (out3, ref3)

    # 4) bf16 logits: DMA'd at input width, upcast to f32 inside the kernel.
    pred4 = pred.astype(jnp.bfloat16)
    out4 = jax.block_until_ready(cross_entropy_loss_mean(pred4, tgt))
    ref4 = _reference(pred4, tgt)
    assert jnp.allclose(out4, ref4, atol=1e-3, rtol=1e-4), (out4, ref4)

    print("KERNEL_OK")
</pallas_src>

<mosaic_0001>
module attributes {stable_mosaic.version = 11 : i64} {
  func.func @_ce_sum_kernel(%arg0: i32, %arg1: i32, %arg2: i32, %arg3: memref<1x4x1x128xf32, #tpu.memory_space<vmem>>, %arg4: memref<1x1x128xi32, #tpu.memory_space<vmem>>, %arg5: memref<1x1x1x1xf32, #tpu.memory_space<vmem>>, %arg6: memref<1x128xf32, #tpu.memory_space<vmem>>) attributes {dimension_semantics = [#tpu.dimension_semantics<parallel>, #tpu.dimension_semantics<parallel>, #tpu.dimension_semantics<arbitrary>], iteration_bounds = array<i64: 2, 1, 1>, scalar_prefetch = 0 : i64, scratch_operands = 1 : i64, tpu.core_type = #tpu.core_type<tc>, window_params = [{transform_indices = @transform_0, window_bounds = array<i64: 1, 4, 1, 128>}, {transform_indices = @transform_1, window_bounds = array<i64: 1, 1, 128>}, {transform_indices = @transform_2, window_bounds = array<i64: 1, 1, 1, 1>}]} {
    %c0_i32 = arith.constant 0 : i32
    %0 = arith.cmpi eq, %arg2, %c0_i32 : i32
    %1 = arith.extui %0 : i1 to i32
    %c0_i32_0 = arith.constant 0 : i32
    %2 = arith.cmpi ne, %1, %c0_i32_0 : i32
    scf.if %2 {
      %cst_40 = arith.constant 0.000000e+00 : f32
      %64 = vector.broadcast %cst_40 : f32 to vector<1x128xf32>
      %c0_41 = arith.constant 0 : index
      %c0_42 = arith.constant 0 : index
      %65 = vector.load %arg6[%c0_41, %c0_42] : memref<1x128xf32, #tpu.memory_space<vmem>>, vector<1x128xf32>
      tpu.vector_store %arg6[%c0_41, %c0_42], %64 {strides = array<i32>} : memref<1x128xf32, #tpu.memory_space<vmem>>, vector<1x128xf32>,
    } else {
    }
    %c0 = arith.constant 0 : index
    %c0_1 = arith.constant 0 : index
    %c0_2 = arith.constant 0 : index
    %3 = vector.load %arg4[%c0, %c0_1, %c0_2] : memref<1x1x128xi32, #tpu.memory_space<vmem>>, vector<1x1x128xi32>
    %4 = vector.shape_cast %3 : vector<1x1x128xi32> to vector<1x128xi32>
    %c0_3 = arith.constant 0 : index
    %c0_4 = arith.constant 0 : index
    %c0_5 = arith.constant 0 : index
    %c0_6 = arith.constant 0 : index
    %5 = vector.load %arg3[%c0_3, %c0_4, %c0_5, %c0_6] : memref<1x4x1x128xf32, #tpu.memory_space<vmem>>, vector<1x1x1x128xf32>
    %6 = vector.shape_cast %5 : vector<1x1x1x128xf32> to vector<1x128xf32>
    %c0_7 = arith.constant 0 : index
    %c1 = arith.constant 1 : index
    %c0_8 = arith.constant 0 : index
    %c0_9 = arith.constant 0 : index
    %7 = vector.load %arg3[%c0_7, %c1, %c0_8, %c0_9] : memref<1x4x1x128xf32, #tpu.memory_space<vmem>>, vector<1x1x1x128xf32>
    %8 = vector.shape_cast %7 : vector<1x1x1x128xf32> to vector<1x128xf32>
    %9 = arith.maximumf %6, %8 : vector<1x128xf32>
    %c0_10 = arith.constant 0 : index
    %c2 = arith.constant 2 : index
    %c0_11 = arith.constant 0 : index
    %c0_12 = arith.constant 0 : index
    %10 = vector.load %arg3[%c0_10, %c2, %c0_11, %c0_12] : memref<1x4x1x128xf32, #tpu.memory_space<vmem>>, vector<1x1x1x128xf32>
    %11 = vector.shape_cast %10 : vector<1x1x1x128xf32> to vector<1x128xf32>
    %12 = arith.maximumf %9, %11 : vector<1x128xf32>
    %c0_13 = arith.constant 0 : index
    %c3 = arith.constant 3 : index
    %c0_14 = arith.constant 0 : index
    %c0_15 = arith.constant 0 : index
    %13 = vector.load %arg3[%c0_13, %c3, %c0_14, %c0_15] : memref<1x4x1x128xf32, #tpu.memory_space<vmem>>, vector<1x1x1x128xf32>
    %14 = vector.shape_cast %13 : vector<1x1x1x128xf32> to vector<1x128xf32>
    %15 = arith.maximumf %12, %14 : vector<1x128xf32>
    %cst = arith.constant 0.000000e+00 : f32
    %16 = vector.broadcast %cst : f32 to vector<1x128xf32>
    %cst_16 = arith.constant 0.000000e+00 : f32
    %17 = vector.broadcast %cst_16 : f32 to vector<1x128xf32>
    %c0_17 = arith.constant 0 : index
    %c0_18 = arith.constant 0 : index
    %c0_19 = arith.constant 0 : index
    %c0_20 = arith.constant 0 : index
    %18 = vector.load %arg3[%c0_17, %c0_18, %c0_19, %c0_20] : memref<1x4x1x128xf32, #tpu.memory_space<vmem>>, vector<1x1x1x128xf32>
    %19 = vector.shape_cast %18 : vector<1x1x1x128xf32> to vector<1x128xf32>
    %20 = arith.subf %19, %15 : vector<1x128xf32>
    %21 = math.exp %20 : vector<1x128xf32>
    %22 = arith.addf %16, %21 : vector<1x128xf32>
    %c0_i32_21 = arith.constant 0 : i32
    %23 = vector.broadcast %c0_i32_21 : i32 to vector<1x128xi32>
    %24 = arith.cmpi eq, %4, %23 : vector<1x128xi32>
    %25 = arith.select %24, %19, %17 : vector<1x128xi1>, vector<1x128xf32>
    %c0_22 = arith.constant 0 : index
    %c1_23 = arith.constant 1 : index
    %c0_24 = arith.constant 0 : index
    %c0_25 = arith.constant 0 : index
    %26 = vector.load %arg3[%c0_22, %c1_23, %c0_24, %c0_25] : memref<1x4x1x128xf32, #tpu.memory_space<vmem>>, vector<1x1x1x128xf32>
    %27 = vector.shape_cast %26 : vector<1x1x1x128xf32> to vector<1x128xf32>
    %28 = arith.subf %27, %15 : vector<1x128xf32>
    %29 = math.exp %28 : vector<1x128xf32>
    %30 = arith.addf %22, %29 : vector<1x128xf32>
    %c1_i32 = arith.constant 1 : i32
    %31 = vector.broadcast %c1_i32 : i32 to vector<1x128xi32>
    %32 = arith.cmpi eq, %4, %31 : vector<1x128xi32>
    %33 = arith.select %32, %27, %25 : vector<1x128xi1>, vector<1x128xf32>
    %c0_26 = arith.constant 0 : index
    %c2_27 = arith.constant 2 : index
    %c0_28 = arith.constant 0 : index
    %c0_29 = arith.constant 0 : index
    %34 = vector.load %arg3[%c0_26, %c2_27, %c0_28, %c0_29] : memref<1x4x1x128xf32, #tpu.memory_space<vmem>>, vector<1x1x1x128xf32>
    %35 = vector.shape_cast %34 : vector<1x1x1x128xf32> to vector<1x128xf32>
    %36 = arith.subf %35, %15 : vector<1x128xf32>
    %37 = math.exp %36 : vector<1x128xf32>
    %38 = arith.addf %30, %37 : vector<1x128xf32>
    %c2_i32 = arith.constant 2 : i32
    %39 = vector.broadcast %c2_i32 : i32 to vector<1x128xi32>
    %40 = arith.cmpi eq, %4, %39 : vector<1x128xi32>
    %41 = arith.select %40, %35, %33 : vector<1x128xi1>, vector<1x128xf32>
    %c0_30 = arith.constant 0 : index
    %c3_31 = arith.constant 3 : index
    %c0_32 = arith.constant 0 : index
    %c0_33 = arith.constant 0 : index
    %42 = vector.load %arg3[%c0_30, %c3_31, %c0_32, %c0_33] : memref<1x4x1x128xf32, #tpu.memory_space<vmem>>, vector<1x1x1x128xf32>
    %43 = vector.shape_cast %42 : vector<1x1x1x128xf32> to vector<1x128xf32>
    %44 = arith.subf %43, %15 : vector<1x128xf32>
    %45 = math.exp %44 : vector<1x128xf32>
    %46 = arith.addf %38, %45 : vector<1x128xf32>
    %c3_i32 = arith.constant 3 : i32
    %47 = vector.broadcast %c3_i32 : i32 to vector<1x128xi32>
    %48 = arith.cmpi eq, %4, %47 : vector<1x128xi32>
    %49 = arith.select %48, %43, %41 : vector<1x128xi1>, vector<1x128xf32>
    %50 = math.log %46 : vector<1x128xf32>
    %51 = arith.addf %15, %50 : vector<1x128xf32>
    %52 = arith.subf %51, %49 : vector<1x128xf32>
    %c0_i32_34 = arith.constant 0 : i32
    %53 = arith.cmpi eq, %arg1, %c0_i32_34 : i32
    %c0_i32_35 = arith.constant 0 : i32
    %54 = arith.cmpi eq, %arg2, %c0_i32_35 : i32
    %55 = arith.andi %53, %54 : i1
    %56 = arith.extui %55 : i1 to i32
    %c0_i32_36 = arith.constant 0 : i32
    %57 = arith.cmpi ne, %56, %c0_i32_36 : i32
    scf.if %57 {
      %64 = tpu.iota {dimensions = array<i32: 0>} : vector<1x128xi32>
      %c128_i32 = arith.constant 128 : i32
      %65 = vector.broadcast %c128_i32 : i32 to vector<1x128xi32>
      %66 = arith.muli %64, %65 : vector<1x128xi32>
      %67 = tpu.iota {dimensions = array<i32: 1>} : vector<1x128xi32>
      %68 = arith.addi %66, %67 : vector<1x128xi32>
      %c16_i32 = arith.constant 16 : i32
      %69 = vector.broadcast %c16_i32 : i32 to vector<1x128xi32>
      %70 = arith.cmpi slt, %68, %69 : vector<1x128xi32>
      %cst_40 = arith.constant 0.000000e+00 : f32
      %71 = vector.broadcast %cst_40 : f32 to vector<1x128xf32>
      %72 = arith.select %70, %52, %71 : vector<1x128xi1>, vector<1x128xf32>
      %c0_41 = arith.constant 0 : index
      %c0_42 = arith.constant 0 : index
      %73 = vector.load %arg6[%c0_41, %c0_42] : memref<1x128xf32, #tpu.memory_space<vmem>>, vector<1x128xf32>
      %74 = arith.addf %73, %72 : vector<1x128xf32>
      %c0_43 = arith.constant 0 : index
      %c0_44 = arith.constant 0 : index
      %75 = vector.load %arg6[%c0_43, %c0_44] : memref<1x128xf32, #tpu.memory_space<vmem>>, vector<1x128xf32>
      tpu.vector_store %arg6[%c0_43, %c0_44], %74 {strides = array<i32>} : memref<1x128xf32, #tpu.memory_space<vmem>>, vector<1x128xf32>,
    } else {
    }
    %true = arith.constant true
    %58 = arith.xori %55, %true : i1
    %59 = arith.extui %58 : i1 to i32
    %c0_i32_37 = arith.constant 0 : i32
    %60 = arith.cmpi ne, %59, %c0_i32_37 : i32
    scf.if %60 {
      %c0_40 = arith.constant 0 : index
      %c0_41 = arith.constant 0 : index
      %64 = vector.load %arg6[%c0_40, %c0_41] : memref<1x128xf32, #tpu.memory_space<vmem>>, vector<1x128xf32>
      %65 = arith.addf %64, %52 : vector<1x128xf32>
      %c0_42 = arith.constant 0 : index
      %c0_43 = arith.constant 0 : index
      %66 = vector.load %arg6[%c0_42, %c0_43] : memref<1x128xf32, #tpu.memory_space<vmem>>, vector<1x128xf32>
      tpu.vector_store %arg6[%c0_42, %c0_43], %65 {strides = array<i32>} : memref<1x128xf32, #tpu.memory_space<vmem>>, vector<1x128xf32>,
    } else {
    }
    %c0_i32_38 = arith.constant 0 : i32
    %61 = arith.cmpi eq, %arg2, %c0_i32_38 : i32
    %62 = arith.extui %61 : i1 to i32
    %c0_i32_39 = arith.constant 0 : i32
    %63 = arith.cmpi ne, %62, %c0_i32_39 : i32
    scf.if %63 {
      %c0_40 = arith.constant 0 : index
      %c0_41 = arith.constant 0 : index
      %64 = vector.load %arg6[%c0_40, %c0_41] : memref<1x128xf32, #tpu.memory_space<vmem>>, vector<1x128xf32>
      %65 = vector.shape_cast %64 : vector<1x128xf32> to vector<1x1x128xf32>
      %cst_42 = arith.constant dense<0.000000e+00> : vector<1xf32>
      %66 = vector.multi_reduction <add>, %65, %cst_42 [1, 2] : vector<1x1x128xf32> to vector<1xf32>
      %67 = vector.shape_cast %66 : vector<1xf32> to vector<1x1x1xf32>
      %68 = vector.extract %67[0, 0, 0] : f32 from vector<1x1x1xf32>
      %69 = vector.broadcast %68 : f32 to vector<1x1x1x1xf32>
      %c0_43 = arith.constant 0 : index
      %c0_44 = arith.constant 0 : index
      %c0_45 = arith.constant 0 : index
      %c0_46 = arith.constant 0 : index
      %70 = vector.load %arg5[%c0_43, %c0_44, %c0_45, %c0_46] : memref<1x1x1x1xf32, #tpu.memory_space<vmem>>, vector<1x1x1x1xf32>
      tpu.vector_store %arg5[%c0_43, %c0_44, %c0_45, %c0_46], %69 {strides = array<i32>} : memref<1x1x1x1xf32, #tpu.memory_space<vmem>>, vector<1x1x1x1xf32>,
    } else {
    }
    return
  }
  func.func @transform_0(%arg0: i32, %arg1: i32, %arg2: i32) -> (i32, i32, i32, i32) {
    %c1_i32 = arith.constant 1 : i32
    %0 = arith.muli %arg1, %c1_i32 : i32
    %1 = arith.addi %0, %arg2 : i32
    %c0_i32 = arith.constant 0 : i32
    %c0_i32_0 = arith.constant 0 : i32
    %c0_i32_1 = arith.constant 0 : i32
    return %arg0, %c0_i32, %1, %c0_i32_0 : i32, i32, i32, i32
  }
  func.func @transform_1(%arg0: i32, %arg1: i32, %arg2: i32) -> (i32, i32, i32) {
    %c1_i32 = arith.constant 1 : i32
    %0 = arith.muli %arg1, %c1_i32 : i32
    %1 = arith.addi %0, %arg2 : i32
    %c0_i32 = arith.constant 0 : i32
    %c0_i32_0 = arith.constant 0 : i32
    return %arg0, %1, %c0_i32 : i32, i32, i32
  }
  func.func @transform_2(%arg0: i32, %arg1: i32, %arg2: i32) -> (i32, i32, i32, i32) {
    %c0_i32 = arith.constant 0 : i32
    %c0_i32_0 = arith.constant 0 : i32
    %c0_i32_1 = arith.constant 0 : i32
    return %arg0, %arg1, %c0_i32, %c0_i32_0 : i32, i32, i32, i32
  }
}

</mosaic_0001>

<bundles_post_ra>
// kernel: tpu_custom_call.1
= control target key start
LH: loop header
LB: loop body
LE: loop exit
PB: predicated region body
PF: predicated region fallthrough
CT: control target
= control target key end

     0   :  { %7 = vsyncpa [#allocation4], 0  ;;  %s756_s0 = inlined_call_operand.hbm [shape: f32[2,4,1,128], index: 0, kind: input, shape index: {}]   ;;  %s757_s1 = inlined_call_operand.hbm [shape: s32[2,1,128], index: 1, kind: input, shape index: {}]   ;;  %s758_s2 = inlined_call_operand.vmem [shape: f32[2,1,1,1], index: 2, kind: output, shape index: {}]  }
   0x1   :  { %9 = vsyncpa [#allocation4 + $0x1], 0 }
   0x2   :  { %10 = vsyncpa [#allocation6], 0 }
   0x3   :  { %12 = vsyncpa [#allocation6 + $0x1], 0  ;;  %s646_s9 = smov 0   ;;  %s648_s10 = smov 0  }
   0x4   :  { %s650_s11 = smov 0   ;;  %s652_s12 = smov 0  }
   0x5   :  { %s654_s13 = smov 0   ;;  %s656_s14 = smov 0  }
   0x6 LB: > { %s424_s15 = sadd.s32 4294967295, %s626_s14   ;;  %s37_s16 = sadd.s32 1, %s622_s13  ;;  %s626_s14 = sphi %s656_s14, %s18_s14   ;;  %s622_s13 = sphi %s654_s13, %s766_s13   ;;  %s618_s12 = sphi %s652_s12, %s765_s12   ;;  %s614_s11 = sphi %s650_s11, %s764_s11   ;;  %s610_s10 = sphi %s648_s10, %s763_s10   ;;  %s606_s9 = sphi %s646_s9, %s762_s9  }
   0x7   : > { %p39_p0 = scmp.ge.s32.totalorder %s37_s16, 2  ;;  %s48_s17 = sadd.s32 1, %s614_s11 }
   0x8   : > { %p55_p1 = scmp.ne.s32.totalorder %s614_s11, %s610_s10  ;;  %p56_p2 = scmp.eq.s32.totalorder %s626_s14, 0 }
   0x9   : > { %s768_s16 = smov (%p39_p0, %s37_s16), 0  ;;  %p61_p4 = scmp.ne.s32.totalorder %s610_s10, %s606_s9 }
   0xa   : > { %p682_p3 = por %p56_p2, %p55_p1  ;;  %s43_s19 = ssub.s32 %s622_s13, %s768_s16 }
   0xb   : > { %p62_p5 = scmp.eq.s32.totalorder %s424_s15, 0  ;;  %p46_p6 = scmp.eq.s32.totalorder %s43_s19, 0 }
   0xc   : > { %p450_p8 = scmp.lt.s32.totalorder %s626_s14, 2  ;;  %s143_s22 = sand.u32 1, %s614_s11  }
   0xd   : > { %p689_p7 = por %p62_p5, %p61_p4  ;;  %s429_s23 = sshll.u32 %s622_s13, 2 }
   0xe   : > { %s695_s21 = scalar_select %p46_p6, %s614_s11, %s48_s17  }
   0xf   : > { %s428_s24 = sshll.u32 %s143_s22, 2  ;;  %s153_s27 = scalar_lea.hbm %s756_s0, %s429_s23 }
  0x10   : > { %s154_s28 = sshll.u32 %s153_s27, 4  ;;  %s147_s29 = scalar_lea.vmem [#allocation3], %s428_s24  ;;  %s155_s28 = int_to_ptr.hbm [resolvable:$true] %s154_s28 }
  0x11   : > { %s156_s30 = sshll.u32 %s147_s29, 4  ;;  %p704_p9 = pnand %p450_p8, %p682_p3  ;;  %s157_s30 = int_to_ptr.vmem [resolvable:$true] %s156_s30 }
  0x12   : > { %p430_p10 = scmp.ge.s32.totalorder %s626_s14, 1  ;;  %p183_p11 = scmp.lt.s32.totalorder %s626_s14, 3 }
  0x13   : > { %s144_s4 = scalar_lea.sflag [#allocation4], %s143_s22  ;;  %s628_s5 = smov 16  }
  0x14   : > { %s629_s6 = smov 1   ;;  %p184_p12 = pnand %p430_p10, %p183_p11 }
  0x15   : > { %446 = dma.hbm_to_vmem [thread:$0]  (!%p704_p9), %s155_s28, 64, %s157_s30, %s144_s4, %s628_s5, %s628_s5, %s629_s6  }
  0x16   : > { %s174_s9 = scalar_lea.hbm %s757_s1, %s622_s13  ;;  %s169_s17 = scalar_lea.vmem [#allocation5], %s143_s22 }
  0x17   : > { %s176_s15 = sshll.u32 %s174_s9, 4  ;;  %s178_s18 = sshll.u32 %s169_s17, 4  ;;  %s177_s15 = int_to_ptr.hbm [resolvable:$true] %s176_s15  ;;  %s179_s18 = int_to_ptr.vmem [resolvable:$true] %s178_s18 }
  0x18   : > { %s167_s19 = scalar_lea.sflag [#allocation6], %s143_s22  ;;  %187 = sbr.rel (%p184_p12) target bundleno = 262 (0x106), region = 28 }
  0x19   : > { %449 = dma.hbm_to_vmem [thread:$0]  (!%p704_p9), %s177_s15, 16, %s179_s18, %s167_s19  }
  0x1a   : > { %s719_s23 = sand.u32 (!%p184_p12), 1, %s610_s10  }
  0x1b   : > { %s431_s24 = sshll.u32 (!%p184_p12), %s719_s23, 2  ;;  %s190_s25 = scalar_lea.sflag (!%p184_p12), [#allocation4], %s719_s23 }
  0x1c   : > { %s193_s26 = scalar_lea.vmem (!%p184_p12), [#allocation3], %s431_s24 }
  0x1d   : > { %597 = dma.done.wait (%p689_p7), %s190_s25, 64  }
  0x1e   : > { %599 = vsyncadd (%p689_p7), %s190_s25, 4294967232  ;;  %s200_s22 = scalar_lea.sflag [#allocation6], %s719_s23  ;;  %s202_s27 = scalar_lea.vmem [#allocation5], %s719_s23 }
  0x1f   : > { %601 = dma.done.wait (%p689_p7), %s200_s22, 16  }
  0x20   : > { %603 = vsyncadd (%p689_p7), %s200_s22, 4294967280  ;;  %v630_v0 = vmov 0.0   ;;  %v243_v1 = vld [vmem:[%s193_s26] sm:$0x1]  ;;  %v432_v2 = vld [vmem:[%s193_s26 + $0x1] sm:$0x1]  ;;  %v286_v21 = vlaneseq }
  0x21   : > { %241 = vst [vmem:[#allocation2] sm:$0x1] %v630_v0  ;;  %v246_v3 = vmax.f32 %v243_v1, %v432_v2  ;;  %v433_v4 = vld [vmem:[%s193_s26 + $0x2] sm:$0x1]  ;;  %v434_v5 = vld [vmem:[%s193_s26 + $0x3] sm:$0x1] }
  0x22   : > { %v242_v18 = vld [vmem:[%s202_s27] sm:$0x1]  ;;  %v287_v25 = vshrl.u32 %v286_v21, 7  ;;  %v290_v29 = vand.u32 127, %v286_v21  ;;  %vm307_vm5 = vcmask 1040384   ;;  %p231_p13 = scmp.lt.s32.totalorder %s618_s12, 1 }
  0x23   : > { %v249_v6 = vmax.f32 %v246_v3, %v433_v4  ;;  %vm257_vm0 = vcmp.eq.s32.totalorder %v242_v18, 0  ;;  %vm263_vm1 = vcmp.eq.s32.totalorder %v242_v18, 1  ;;  %vm269_vm2 = vcmp.eq.s32.totalorder %v242_v18, 2 }
  0x24   : > { %v258_v26 = vsel %vm257_vm0, %v243_v1, 0.0  ;;  %v288_v28 = vmul.u32 128, %v287_v25  ;;  %vm275_vm3 = vcmp.eq.s32.totalorder %v242_v18, 3  ;;  %s770_s12 = smov (!%p231_p13, %s618_s12), 1  ;;  %vm319_vm6 = vcmask 0  }
  0x25   : > { %v252_v7 = vmax.f32 %v249_v6, %v434_v5  ;;  %v264_v27 = vsel %vm263_vm1, %v432_v2, %v258_v26  ;;  %s236_s29 = scalar_lea.vmem %s758_s2, %s770_s12 }
  0x26   : > { %v270_v30 = vsel %vm269_vm2, %v433_v4, %v264_v27  ;;  %v291_v32 = vadd.s32 %v290_v29, %v288_v28 }
  0x27   : > { %v253_v8 = vsub.f32 %v243_v1, %v252_v7  ;;  %v259_v9 = vsub.f32 %v432_v2, %v252_v7  ;;  %v265_v10 = vsub.f32 %v433_v4, %v252_v7  ;;  %v271_v11 = vsub.f32 %v434_v5, %v252_v7 }
  0x28   : > { %v276_v34 = vsel %vm275_vm3, %v434_v5, %v270_v30  ;;  %vm292_vm4 = vcmp.lt.s32.totalorder %v291_v32, 16  ;;  %v294_v37 = vld [vmem:[#allocation2] sm:$0x1] }
  0x29   : > { %v254_v12 = vmul.f32 1.442695, %v253_v8  ;;  %v260_v13 = vmul.f32 1.442695, %v259_v9  ;;  %v266_v14 = vmul.f32 1.442695, %v265_v10 }
  0x2a   : > { %v272_v15 = vmul.f32 1.442695, %v271_v11 }
  0x2b   : > { %502 = vpow2.f32 %v254_v12 }
  0x2c   : > { %504 = vpow2.f32 %v260_v13 }
  0x2d   : > { %506 = vpow2.f32 %v266_v14 }
  0x2e   : > { %508 = vpow2.f32 %v272_v15 }
  0x31   : > { %v503_v16 = vpop.eup %502 }
  0x32   : > { %v505_v17 = vpop.eup %504 }
  0x33   : > { %v507_v19 = vpop.eup %506  ;;  %v262_v20 = vadd.f32 %v505_v17, %v503_v16 }
  0x34   : > { %v509_v22 = vpop.eup %508 }
  0x35   : > { %v268_v23 = vadd.f32 %v507_v19, %v262_v20 }
  0x37   : > { %v274_v24 = vadd.f32 %v509_v22, %v268_v23 }
  0x39   : > { %510 = vlog2.f32 %v274_v24 }
  0x3f   : > { %v511_v31 = vpop.eup %510 }
  0x40   : > { %v278_v33 = vmul.f32 0.6931472, %v511_v31 }
  0x42   : > { %v279_v35 = vadd.f32 %v278_v33, %v252_v7 }
  0x44   : > { %v280_v36 = vsub.f32 %v279_v35, %v276_v34 }
  0x46   : > { %v293_v38 = vsel %vm292_vm4, %v280_v36, 0.0 }
  0x47   : > { %v295_v39 = vadd.f32 %v294_v37, %v293_v38 }
  0x49   : > { %296 = vst [vmem:[#allocation2] sm:$0x1] %v295_v39 }
  0x50   : > { %v306_v40 = vld [vmem:[#allocation2] sm:$0x1] }
  0x51   : > { %v308_v41 = vsel %vm307_vm5, %v306_v40, 0.0 }
  0x52   : > { %309 = vadd.xlane.f32.xlu0 %v308_v41 }
  0xc5   : > { %v310_v42 = vpop.xlane.xlu0 %309 }
  0xc6   : > { %v311_v43 = vrot.slane %v310_v42, 4 }
  0xc8   : > { %v312_v44 = vadd.f32 %v311_v43, %v310_v42 }
  0xca   : > { %v313_v45 = vrot.slane %v312_v44, 2 }
  0xcc   : > { %v314_v46 = vadd.f32 %v313_v45, %v312_v44 }
  0xce   : > { %v315_v47 = vrot.slane %v314_v46, 1 }
  0xd0   : > { %v316_v48 = vadd.f32 %v315_v47, %v314_v46 }
  0xd2   : > { %437 = vpush %v316_v48 }
 0x103   : > { %s438_s30 = spop %437 }
 0x104   : > { %v318_v49 = vstv %s438_s30 }
 0x105   : > { %320 = vst.msk [vmem:[%s236_s29] sm:$0x1] %vm319_vm6, %v318_v49 }
 0x106 PF: > { %s18_s14 = sadd.s32 1, %s626_s14   ;;  %s762_s9 = smov %s610_s10 }
 0x107   : > { %p15_p0 = scmp.ge.s32.totalorder %s18_s14, 4   ;;  %s763_s10 = smov %s614_s11 }
 0x108   : > { %s764_s11 = smov %s695_s21  ;;  %s765_s12 = smov %s622_s13 }
 0x109   : > { %s766_s13 = smov %s768_s16  ;;  %17 = sbr.rel (!%p15_p0) target bundleno = 6 (0x6), region = 100 }
 0x10e   :  { %344 = vsyncpa [#allocation4], 1 }
 0x10f   :  { %346 = vsyncpa [#allocation4 + $0x1], 1 }
 0x110   :  { %347 = vsyncpa [#allocation6], 1 }
 0x111   :  { %349 = vsyncpa [#allocation6 + $0x1], 1 }

</bundles_post_ra>
